<compile_context>
chip_gen: v5e
topology: v5e:2x2
jax: 0.10.0
libtpu: 0.0.40
codegen_flags: <defaults>
</compile_context>

<pallas_src>
import functools
import math

import jax
import jax.numpy as jnp
from jax.experimental import pallas as pl
from jax.experimental.pallas import tpu as pltpu

EXPANSION = 4          # Bottle2neck.expansion
BN_EPS = 1e-5


def _round_up(x, m):
    return (x + m - 1) // m * m


# ---------------------------------------------------------------------------
# Pallas kernel 1: tiled GEMM, fused bias (+ optional residual) (+ ReLU).
# ---------------------------------------------------------------------------
def _gemm_kernel(x_ref, w_ref, b_ref, o_ref, acc_ref, *, nk, relu):
    @pl.when(pl.program_id(2) == 0)
    def _():
        acc_ref[...] = jnp.zeros_like(acc_ref)

    acc_ref[...] += jnp.dot(x_ref[...], w_ref[...],
                            preferred_element_type=jnp.float32)

    @pl.when(pl.program_id(2) == nk - 1)
    def _():
        y = acc_ref[...] + b_ref[...].astype(jnp.float32)
        if relu:
            y = jnp.maximum(y, 0.0)
        o_ref[...] = y.astype(o_ref.dtype)


def _gemm_res_kernel(x_ref, w_ref, b_ref, r_ref, o_ref, acc_ref, *, nk, relu):
    @pl.when(pl.program_id(2) == 0)
    def _():
        acc_ref[...] = jnp.zeros_like(acc_ref)

    acc_ref[...] += jnp.dot(x_ref[...], w_ref[...],
                            preferred_element_type=jnp.float32)

    @pl.when(pl.program_id(2) == nk - 1)
    def _():
        y = (acc_ref[...] + b_ref[...].astype(jnp.float32)
             + r_ref[...].astype(jnp.float32))
        if relu:
            y = jnp.maximum(y, 0.0)
        o_ref[...] = y.astype(o_ref.dtype)


def pallas_gemm(x, w, b, *, relu=False, residual=None, tm=256, tn=128, tk=128):
    """out = act(x @ w + b [+ residual]); x:(M,K), w:(K,N), b:(N,)."""
    M, K = x.shape
    K2, N = w.shape
    assert K == K2, (x.shape, w.shape)
    Mp, Np, Kp = _round_up(M, tm), _round_up(N, tn), _round_up(K, tk)
    nk = Kp // tk

    xp = jnp.pad(x, ((0, Mp - M), (0, Kp - K)))
    wp = jnp.pad(w, ((0, Kp - K), (0, Np - N)))
    bp = jnp.pad(b.reshape(1, -1), ((0, 0), (0, Np - N)))

    in_specs = [
        pl.BlockSpec((tm, tk), lambda i, j, k: (i, k)),
        pl.BlockSpec((tk, tn), lambda i, j, k: (k, j)),
        pl.BlockSpec((1, tn), lambda i, j, k: (0, j)),
    ]
    args = [xp, wp, bp]
    if residual is not None:
        assert residual.shape == (M, N), residual.shape
        rp = jnp.pad(residual, ((0, Mp - M), (0, Np - N)))
        in_specs.append(pl.BlockSpec((tm, tn), lambda i, j, k: (i, j)))
        args.append(rp)
        kernel = functools.partial(_gemm_res_kernel, nk=nk, relu=relu)
    else:
        kernel = functools.partial(_gemm_kernel, nk=nk, relu=relu)

    out = pl.pallas_call(
        kernel,
        out_shape=jax.ShapeDtypeStruct((Mp, Np), x.dtype),
        grid=(Mp // tm, Np // tn, nk),
        in_specs=in_specs,
        out_specs=pl.BlockSpec((tm, tn), lambda i, j, k: (i, j)),
        scratch_shapes=[pltpu.VMEM((tm, tn), jnp.float32)],
        compiler_params=pltpu.CompilerParams(
            dimension_semantics=("parallel", "parallel", "arbitrary")),
    )(*args)
    return out[:M, :N]


# ---------------------------------------------------------------------------
# Pallas kernel 2: window pooling (max / avg) over pre-gathered patches.
# ---------------------------------------------------------------------------
def _pool_kernel(p_ref, o_ref, *, op, inv_count):
    P = p_ref.shape[0]
    if op == "max":
        r = p_ref[0]
        for q in range(1, P):
            r = jnp.maximum(r, p_ref[q])
        o_ref[...] = r.astype(o_ref.dtype)
    else:  # avg (count_include_pad=True, PyTorch default)
        r = p_ref[0].astype(jnp.float32)
        for q in range(1, P):
            r = r + p_ref[q].astype(jnp.float32)
        o_ref[...] = (r * inv_count).astype(o_ref.dtype)


def pallas_pool2d(x, *, ksize, stride, padding, op):
    """x: (N, H, W, C) NHWC.  op in {"max", "avg"}."""
    N, H, W, C = x.shape
    pad_value = float("-inf") if op == "max" else 0.0
    if padding:
        x = jnp.pad(x, ((0, 0), (padding, padding), (padding, padding), (0, 0)),
                    constant_values=pad_value)
    Hp, Wp = x.shape[1], x.shape[2]
    Ho = (Hp - ksize) // stride + 1
    Wo = (Wp - ksize) // stride + 1
    patches = [x[:, i:i + stride * (Ho - 1) + 1:stride,
                  j:j + stride * (Wo - 1) + 1:stride, :]
               for i in range(ksize) for j in range(ksize)]
    p = jnp.stack(patches, axis=0).reshape(ksize * ksize, N * Ho * Wo, C)
    P, M, _ = p.shape

    itemsize = jnp.dtype(x.dtype).itemsize
    if M <= 512:
        tm, Mp = M, M                      # full-dim block (allowed)
    else:
        tm = 512
        while tm > 8 and P * tm * C * itemsize > (4 << 20):
            tm //= 2
        Mp = _round_up(M, tm)
        if Mp != M:
            p = jnp.pad(p, ((0, 0), (0, Mp - M), (0, 0)))

    out = pl.pallas_call(
        functools.partial(_pool_kernel, op=op, inv_count=1.0 / (ksize * ksize)),
        out_shape=jax.ShapeDtypeStruct((Mp, C), x.dtype),
        grid=(Mp // tm,),
        in_specs=[pl.BlockSpec((P, tm, C), lambda i: (0, i, 0))],
        out_specs=pl.BlockSpec((tm, C), lambda i: (i, 0)),
        compiler_params=pltpu.CompilerParams(
            dimension_semantics=("parallel",)),
    )(p)
    return out[:M].reshape(N, Ho, Wo, C)


# ---------------------------------------------------------------------------
# Convolution (via im2col) + folded BatchNorm, lowered onto the GEMM kernel.
# ---------------------------------------------------------------------------
def _im2col(x, ksize, stride, padding):
    """x: (N,H,W,C) -> cols: (N*Ho*Wo, ksize*ksize*C), (kh, kw, C) order."""
    N, H, W, C = x.shape
    if padding:
        x = jnp.pad(x, ((0, 0), (padding, padding), (padding, padding), (0, 0)))
    Hp, Wp = x.shape[1], x.shape[2]
    Ho = (Hp - ksize) // stride + 1
    Wo = (Wp - ksize) // stride + 1
    if ksize == 1 and stride == 1:
        return x.reshape(N * Ho * Wo, C), Ho, Wo
    patches = [x[:, i:i + stride * (Ho - 1) + 1:stride,
                  j:j + stride * (Wo - 1) + 1:stride, :]
               for i in range(ksize) for j in range(ksize)]
    cols = jnp.stack(patches, axis=3).reshape(N * Ho * Wo, ksize * ksize * C)
    return cols, Ho, Wo


def conv_bn(x, p, *, stride, padding, relu, residual=None):
    """Conv2d (no bias) + folded BN [+ residual] [+ ReLU], NHWC."""
    ksize, _, _, cout = p["w"].shape
    cols, Ho, Wo = _im2col(x, ksize, stride, padding)
    w2d = (p["w"] * p["scale"]).reshape(-1, cout)    # fold BN scale into W
    res2d = residual.reshape(-1, cout) if residual is not None else None
    y = pallas_gemm(cols, w2d, p["bias"], relu=relu, residual=res2d)
    return y.reshape(x.shape[0], Ho, Wo, cout)


# ---------------------------------------------------------------------------
# Parameter construction (matches the PyTorch init scheme).
# ---------------------------------------------------------------------------
def make_conv_bn_params(key, cin, cout, ksize):
    fan_out = ksize * ksize * cout
    std = math.sqrt(2.0 / fan_out)       # kaiming_normal_, fan_out, relu
    w = std * jax.random.normal(key, (ksize, ksize, cin, cout), jnp.float32)
    gamma = jnp.ones((cout,), jnp.float32)
    beta = jnp.zeros((cout,), jnp.float32)
    running_mean = jnp.zeros((cout,), jnp.float32)
    running_var = jnp.ones((cout,), jnp.float32)
    scale = gamma / jnp.sqrt(running_var + BN_EPS)
    bias = beta - running_mean * scale
    return {"w": w, "scale": scale, "bias": bias}


def make_block(key, inplanes, planes, stride, has_downsample, stype,
               base_width, scale):
    width = int(math.floor(planes * (base_width / 64.0)))
    nums = 1 if scale == 1 else scale - 1
    keys = jax.random.split(key, nums + 3)
    params = {
        "conv1": make_conv_bn_params(keys[0], inplanes, width * scale, 1),
        "convs": [make_conv_bn_params(keys[1 + i], width, width, 3)
                  for i in range(nums)],
        "conv3": make_conv_bn_params(keys[1 + nums], width * scale,
                                     planes * EXPANSION, 1),
    }
    if has_downsample:
        params["downsample"] = make_conv_bn_params(
            keys[2 + nums], inplanes, planes * EXPANSION, 1)
    cfg = {"stride": stride, "width": width, "scale": scale,
           "stype": stype, "has_downsample": has_downsample}
    return params, cfg


def make_res2net_params(key, layers, base_width=26, scale=4, num_classes=1000):
    keys = jax.random.split(key, 6)
    params = {"conv1": make_conv_bn_params(keys[0], 3, 64, 7), "layers": []}
    cfgs = []
    inplanes = 64
    for idx, (planes, blocks, stride) in enumerate(
            zip((64, 128, 256, 512), layers, (1, 2, 2, 2))):
        bkeys = jax.random.split(keys[1 + idx], blocks)
        layer_params, layer_cfgs = [], []
        has_ds = (stride != 1) or (inplanes != planes * EXPANSION)
        bp, bc = make_block(bkeys[0], inplanes, planes, stride, has_ds,
                            "stage", base_width, scale)
        layer_params.append(bp)
        layer_cfgs.append(bc)
        inplanes = planes * EXPANSION
        for b in range(1, blocks):
            bp, bc = make_block(bkeys[b], inplanes, planes, 1, False,
                                "normal", base_width, scale)
            layer_params.append(bp)
            layer_cfgs.append(bc)
        params["layers"].append(layer_params)
        cfgs.append(layer_cfgs)
    fan_in = 512 * EXPANSION
    bound = 1.0 / math.sqrt(fan_in)
    kfw, kfb = jax.random.split(keys[5])
    params["fc"] = {
        "w": jax.random.uniform(kfw, (fan_in, num_classes), jnp.float32,
                                -bound, bound),
        "b": jax.random.uniform(kfb, (num_classes,), jnp.float32,
                                -bound, bound),
    }
    return params, cfgs


# ---------------------------------------------------------------------------
# Forward pass (mirrors Res2Net.forward / Bottle2neck.forward).
# ---------------------------------------------------------------------------
def bottle2neck_forward(x, p, cfg):
    stride, width = cfg["stride"], cfg["width"]
    scale, stype = cfg["scale"], cfg["stype"]
    nums = 1 if scale == 1 else scale - 1

    out = conv_bn(x, p["conv1"], stride=1, padding=0, relu=True)
    spx = [out[..., i * width:(i + 1) * width] for i in range(scale)]

    pieces = []
    sp = None
    for i in range(nums):
        sp = spx[i] if (i == 0 or stype == "stage") else sp + spx[i]
        sp = conv_bn(sp, p["convs"][i], stride=stride, padding=1, relu=True)
        pieces.append(sp)
    if scale != 1:
        if stype == "normal":
            pieces.append(spx[nums])
        else:  # 'stage'
            pieces.append(pallas_pool2d(spx[nums], ksize=3, stride=stride,
                                        padding=1, op="avg"))
    out = jnp.concatenate(pieces, axis=-1)

    if cfg["has_downsample"]:
        residual = conv_bn(x, p["downsample"], stride=stride, padding=0,
                           relu=False)
    else:
        residual = x
    # conv3 + bn3 + residual add + final ReLU, fused in one GEMM epilogue.
    return conv_bn(out, p["conv3"], stride=1, padding=0, relu=True,
                   residual=residual)


def res2net_forward(x_nchw, params, cfgs):
    x = jnp.transpose(x_nchw, (0, 2, 3, 1))              # NCHW -> NHWC
    x = conv_bn(x, params["conv1"], stride=2, padding=3, relu=True)
    x = pallas_pool2d(x, ksize=3, stride=2, padding=1, op="max")
    for layer_params, layer_cfgs in zip(params["layers"], cfgs):
        for bp, bc in zip(layer_params, layer_cfgs):
            x = bottle2neck_forward(x, bp, bc)
    x = pallas_pool2d(x, ksize=7, stride=1, padding=0, op="avg")
    x = x.reshape(x.shape[0], -1)                        # (N, 512*EXPANSION)
    return pallas_gemm(x, params["fc"]["w"], params["fc"]["b"], relu=False)


if __name__ == "__main__":
    root = jax.random.PRNGKey(0)
    k_params, k_input, k_chk = jax.random.split(root, 3)

    # --- light self-checks of the two Pallas kernels ------------------------
    kx, kw, kb = jax.random.split(k_chk, 3)
    xt = jax.random.normal(kx, (96, 72), jnp.float32)
    wt = jax.random.normal(kw, (72, 80), jnp.float32) * 0.1
    bt = jax.random.normal(kb, (80,), jnp.float32)
    got = jax.block_until_ready(pallas_gemm(xt, wt, bt, relu=True))
    want = jnp.maximum(xt @ wt + bt, 0.0)
    assert bool(jnp.allclose(got, want, atol=1e-1, rtol=1e-1)), "GEMM mismatch"

    pt = jax.random.normal(kx, (1, 10, 10, 16), jnp.float32)
    got = jax.block_until_ready(
        pallas_pool2d(pt, ksize=3, stride=2, padding=1, op="max"))
    want = jax.lax.reduce_window(pt, jnp.array(-jnp.inf, pt.dtype), jax.lax.max,
                                 (1, 3, 3, 1), (1, 2, 2, 1),
                                 [(0, 0), (1, 1), (1, 1), (0, 0)])
    assert bool(jnp.array_equal(got, want)), "max-pool mismatch"

    # --- full Res2Net forward ----------------------------------------------
    # layers=(1,1,1,1) keeps the example small; 3x224x224 input is what the
    # forward implies (stride-32 backbone followed by AvgPool2d(7)).
    params, cfgs = make_res2net_params(k_params, layers=(1, 1, 1, 1),
                                       base_width=26, scale=4,
                                       num_classes=1000)
    x = jax.random.normal(k_input, (2, 3, 224, 224), jnp.float32)

    fwd = jax.jit(functools.partial(res2net_forward, cfgs=cfgs))
    logits = jax.block_until_ready(fwd(x, params))

    assert logits.shape == (2, 1000), logits.shape
    assert bool(jnp.all(jnp.isfinite(logits))), "non-finite logits"
    print("KERNEL_OK")
</pallas_src>

<mosaic_0001>
module attributes {stable_mosaic.version = 11 : i64} {
  func.func @_gemm_kernel(%arg0: i32, %arg1: i32, %arg2: i32, %arg3: memref<256x128xf32, #tpu.memory_space<vmem>>, %arg4: memref<128x128xf32, #tpu.memory_space<vmem>>, %arg5: memref<1x128xf32, #tpu.memory_space<vmem>>, %arg6: memref<256x128xf32, #tpu.memory_space<vmem>>, %arg7: memref<256x128xf32, #tpu.memory_space<vmem>>) attributes {dimension_semantics = [#tpu.dimension_semantics<parallel>, #tpu.dimension_semantics<parallel>, #tpu.dimension_semantics<arbitrary>], iteration_bounds = array<i64: 1, 1, 1>, scalar_prefetch = 0 : i64, scratch_operands = 1 : i64, tpu.core_type = #tpu.core_type<tc>, window_params = [{transform_indices = @transform_0, window_bounds = array<i64: 256, 128>}, {transform_indices = @transform_1, window_bounds = array<i64: 128, 128>}, {transform_indices = @transform_2, window_bounds = array<i64: 1, 128>}, {transform_indices = @transform_3, window_bounds = array<i64: 256, 128>}]} {
    %c0_i32 = arith.constant 0 : i32
    %0 = arith.cmpi eq, %arg2, %c0_i32 : i32
    %1 = arith.extui %0 : i1 to i32
    %c0_i32_0 = arith.constant 0 : i32
    %2 = arith.cmpi ne, %1, %c0_i32_0 : i32
    scf.if %2 {
      %cst_10 = arith.constant 0.000000e+00 : f32
      %12 = vector.broadcast %cst_10 : f32 to vector<256x128xf32>
      %c0_11 = arith.constant 0 : index
      %c0_12 = arith.constant 0 : index
      %13 = vector.load %arg7[%c0_11, %c0_12] : memref<256x128xf32, #tpu.memory_space<vmem>>, vector<256x128xf32>
      tpu.vector_store %arg7[%c0_11, %c0_12], %12 {strides = array<i32>} : memref<256x128xf32, #tpu.memory_space<vmem>>, vector<256x128xf32>,
    } else {
    }
    %c0 = arith.constant 0 : index
    %c0_1 = arith.constant 0 : index
    %3 = vector.load %arg7[%c0, %c0_1] : memref<256x128xf32, #tpu.memory_space<vmem>>, vector<256x128xf32>
    %c0_2 = arith.constant 0 : index
    %c0_3 = arith.constant 0 : index
    %4 = vector.load %arg3[%c0_2, %c0_3] : memref<256x128xf32, #tpu.memory_space<vmem>>, vector<256x128xf32>
    %c0_4 = arith.constant 0 : index
    %c0_5 = arith.constant 0 : index
    %5 = vector.load %arg4[%c0_4, %c0_5] : memref<128x128xf32, #tpu.memory_space<vmem>>, vector<128x128xf32>
    %cst = arith.constant dense<0.000000e+00> : vector<256x128xf32>
    %6 = tpu.matmul %4, %5, %cst {dimension_numbers = #tpu.dot_dimension_numbers<[1], [0], [0], [1], [0, 0, 1, 1], [], []>} : vector<256x128xf32>, vector<128x128xf32>, vector<256x128xf32> -> vector<256x128xf32>
    %7 = arith.addf %3, %6 : vector<256x128xf32>
    %c0_6 = arith.constant 0 : index
    %c0_7 = arith.constant 0 : index
    %8 = vector.load %arg7[%c0_6, %c0_7] : memref<256x128xf32, #tpu.memory_space<vmem>>, vector<256x128xf32>
    tpu.vector_store %arg7[%c0_6, %c0_7], %7 {strides = array<i32>} : memref<256x128xf32, #tpu.memory_space<vmem>>, vector<256x128xf32>,
    %c0_i32_8 = arith.constant 0 : i32
    %9 = arith.cmpi eq, %arg2, %c0_i32_8 : i32
    %10 = arith.extui %9 : i1 to i32
    %c0_i32_9 = arith.constant 0 : i32
    %11 = arith.cmpi ne, %10, %c0_i32_9 : i32
    scf.if %11 {
      %c0_10 = arith.constant 0 : index
      %c0_11 = arith.constant 0 : index
      %12 = vector.load %arg7[%c0_10, %c0_11] : memref<256x128xf32, #tpu.memory_space<vmem>>, vector<256x128xf32>
      %c0_12 = arith.constant 0 : index
      %c0_13 = arith.constant 0 : index
      %13 = vector.load %arg5[%c0_12, %c0_13] : memref<1x128xf32, #tpu.memory_space<vmem>>, vector<1x128xf32>
      %14 = vector.broadcast %13 : vector<1x128xf32> to vector<256x128xf32>
      %15 = arith.addf %12, %14 : vector<256x128xf32>
      %cst_14 = arith.constant 0.000000e+00 : f32
      %16 = vector.broadcast %cst_14 : f32 to vector<256x128xf32>
      %17 = arith.maximumf %15, %16 : vector<256x128xf32>
      %c0_15 = arith.constant 0 : index
      %c0_16 = arith.constant 0 : index
      %18 = vector.load %arg6[%c0_15, %c0_16] : memref<256x128xf32, #tpu.memory_space<vmem>>, vector<256x128xf32>
      tpu.vector_store %arg6[%c0_15, %c0_16], %17 {strides = array<i32>} : memref<256x128xf32, #tpu.memory_space<vmem>>, vector<256x128xf32>,
    } else {
    }
    return
  }
  func.func @transform_0(%arg0: i32, %arg1: i32, %arg2: i32) -> (i32, i32) {
    %c0_i32 = arith.constant 0 : i32
    return %arg0, %arg2 : i32, i32
  }
  func.func @transform_1(%arg0: i32, %arg1: i32, %arg2: i32) -> (i32, i32) {
    %c0_i32 = arith.constant 0 : i32
    return %arg2, %arg1 : i32, i32
  }
  func.func @transform_2(%arg0: i32, %arg1: i32, %arg2: i32) -> (i32, i32) {
    %c0_i32 = arith.constant 0 : i32
    %c0_i32_0 = arith.constant 0 : i32
    return %c0_i32, %arg1 : i32, i32
  }
  func.func @transform_3(%arg0: i32, %arg1: i32, %arg2: i32) -> (i32, i32) {
    %c0_i32 = arith.constant 0 : i32
    return %arg0, %arg1 : i32, i32
  }
}

</mosaic_0001>

<bundles_post_ra>
// kernel: tpu_custom_call.1
= control target key start
LH: loop header
LB: loop body
LE: loop exit
PB: predicated region body
PF: predicated region fallthrough
CT: control target
= control target key end

     0   :  { %8 = vsyncpa [#allocation4], 0  ;;  %s707_s0 = inlined_call_operand.hbm [shape: f32[256,128], index: 0, kind: input, shape index: {}]   ;;  %s708_s1 = inlined_call_operand.hbm [shape: f32[128,128], index: 1, kind: input, shape index: {}]   ;;  %s709_s2 = inlined_call_operand.vmem [shape: f32[1,128], index: 2, kind: input, shape index: {}]   ;;  %s710_s3 = inlined_call_operand.hbm [shape: f32[256,128], index: 3, kind: output, shape index: {}]  }
   0x1   :  { %9 = vsyncpa [#allocation7], 0 }
   0x2   :  { %10 = vsyncpa [#allocation5], 0  ;;  %s15_s14 = sshll.u32 %s707_s0, 4  ;;  %s627_s15 = smov [#allocation3]   ;;  %s16_s14 = int_to_ptr.hbm [resolvable:$true] %s15_s14 }
   0x3   :  { %s17_s16 = sshll.u32 %s627_s15, 4  ;;  %s28_s19 = sshll.u32 %s708_s1, 4  ;;  %s18_s16 = int_to_ptr.vmem [resolvable:$true] %s17_s16  ;;  %s29_s19 = int_to_ptr.hbm [resolvable:$true] %s28_s19 }
   0x4   :  { %s628_s20 = smov 128   ;;  %s629_s21 = smov 8  }
   0x5   :  { %23 = dma.hbm_to_vmem [thread:$0]  %s16_s14, 4096, %s18_s16, [#allocation4], %s628_s20, %s628_s20, %s629_s21  }
   0x6   :  { %s630_s22 = smov [#allocation6]  }
   0x7   :  { %s30_s23 = sshll.u32 %s630_s22, 4  ;;  %s31_s23 = int_to_ptr.vmem [resolvable:$true] %s30_s23 }
   0x8   :  { %36 = dma.hbm_to_vmem [thread:$0]  %s29_s19, 2048, %s31_s23, [#allocation7], %s628_s20, %s628_s20, %s629_s21  }
   0x9   :  { %621 = dma.done.wait [#allocation4], 4096  }
   0xa   :  { %622 = vsyncadd [#allocation4], 4294963200 }
   0xb   :  { %623 = dma.done.wait [#allocation7], 2048  }
   0xc   :  { %624 = vsyncadd [#allocation7], 4294965248  ;;  %v162_v0 = vld [vmem:[#allocation6 + $0x78] sm:$0xff]  ;;  %v161_v1 = vld [vmem:[#allocation6 + $0x70] sm:$0xff]  ;;  %s481_s27 = sshll.u32 %s710_s3, 4  ;;  %s482_s27 = int_to_ptr.hbm [resolvable:$true] %s481_s27 }
   0xd   :  { %496 = vmatpush.msra.mxu2 %v162_v0  ;;  %497 = vmatpush.msra.mxu3 %v162_v0  ;;  %v160_v2 = vld [vmem:[#allocation6 + $0x68] sm:$0xff]  ;;  %v159_v3 = vld [vmem:[#allocation6 + $0x60] sm:$0xff]  ;;  %v158_v4 = vld [vmem:[#allocation6 + $0x58] sm:$0xff] }
   0xe   :  { %163 = vmatpush.msra.mxu0 %v162_v0  ;;  %495 = vmatpush.msra.mxu1 %v162_v0  ;;  %v157_v5 = vld [vmem:[#allocation6 + $0x50] sm:$0xff]  ;;  %v156_v6 = vld [vmem:[#allocation6 + $0x48] sm:$0xff]  ;;  %v155_v7 = vld [vmem:[#allocation6 + $0x40] sm:$0xff] }
   0xf   :  { %499 = vmatpush.msra.mxu2 %v161_v1  ;;  %500 = vmatpush.msra.mxu3 %v161_v1  ;;  %v154_v8 = vld [vmem:[#allocation6 + $0x38] sm:$0xff]  ;;  %v153_v9 = vld [vmem:[#allocation6 + $0x30] sm:$0xff]  ;;  %v152_v10 = vld [vmem:[#allocation6 + $0x28] sm:$0xff] }
  0x10   :  { %164 = vmatpush.msra.mxu0 %v161_v1  ;;  %498 = vmatpush.msra.mxu1 %v161_v1  ;;  %v151_v11 = vld [vmem:[#allocation6 + $0x20] sm:$0xff]  ;;  %v150_v12 = vld [vmem:[#allocation6 + $0x18] sm:$0xff]  ;;  %v149_v13 = vld [vmem:[#allocation6 + $0x10] sm:$0xff] }
  0x11   :  { %502 = vmatpush.msra.mxu2 %v160_v2  ;;  %503 = vmatpush.msra.mxu3 %v160_v2  ;;  %v148_v14 = vld [vmem:[#allocation6 + $0x8] sm:$0xff]  ;;  %v147_v15 = vld [vmem:[#allocation6] sm:$0xff]  ;;  %v133_v24 = vld [vmem:[#allocation3 + $0x90] sm:$0xff] }
  0x12   :  { %165 = vmatpush.msra.mxu0 %v160_v2  ;;  %501 = vmatpush.msra.mxu1 %v160_v2  ;;  %v131_v16 = vld [vmem:[#allocation3 + $0x80] sm:$0xff]  ;;  %v132_v20 = vld [vmem:[#allocation3 + $0x88] sm:$0xff]  ;;  %v141_v25 = vld [vmem:[#allocation3 + $0xd0] sm:$0xff] }
  0x13   :  { %505 = vmatpush.msra.mxu2 %v159_v3  ;;  %506 = vmatpush.msra.mxu3 %v159_v3  ;;  %v139_v17 = vld [vmem:[#allocation3 + $0xc0] sm:$0xff]  ;;  %v140_v21 = vld [vmem:[#allocation3 + $0xc8] sm:$0xff]  ;;  %v117_v26 = vld [vmem:[#allocation3 + $0x10] sm:$0xff] }
  0x14   :  { %166 = vmatpush.msra.mxu0 %v159_v3  ;;  %504 = vmatpush.msra.mxu1 %v159_v3  ;;  %v115_v18 = vld [vmem:[#allocation3] sm:$0xff]  ;;  %v116_v22 = vld [vmem:[#allocation3 + $0x8] sm:$0xff]  ;;  %v125_v27 = vld [vmem:[#allocation3 + $0x50] sm:$0xff] }
  0x15   :  { %508 = vmatpush.msra.mxu2 %v158_v4  ;;  %509 = vmatpush.msra.mxu3 %v158_v4  ;;  %v123_v19 = vld [vmem:[#allocation3 + $0x40] sm:$0xff]  ;;  %v124_v23 = vld [vmem:[#allocation3 + $0x48] sm:$0xff]  ;;  %v134_v28 = vld [vmem:[#allocation3 + $0x98] sm:$0xff] }
  0x16   :  { %167 = vmatpush.msra.mxu0 %v158_v4  ;;  %507 = vmatpush.msra.mxu1 %v158_v4  ;;  %v142_v29 = vld [vmem:[#allocation3 + $0xd8] sm:$0xff]  ;;  %v135_v32 = vld [vmem:[#allocation3 + $0xa0] sm:$0xff]  ;;  %v136_v36 = vld [vmem:[#allocation3 + $0xa8] sm:$0xff] }
  0x17   :  { %511 = vmatpush.msra.mxu2 %v157_v5  ;;  %512 = vmatpush.msra.mxu3 %v157_v5  ;;  %v118_v30 = vld [vmem:[#allocation3 + $0x18] sm:$0xff]  ;;  %v143_v33 = vld [vmem:[#allocation3 + $0xe0] sm:$0xff]  ;;  %v144_v37 = vld [vmem:[#allocation3 + $0xe8] sm:$0xff] }
  0x18   :  { %168 = vmatpush.msra.mxu0 %v157_v5  ;;  %510 = vmatpush.msra.mxu1 %v157_v5  ;;  %v126_v31 = vld [vmem:[#allocation3 + $0x58] sm:$0xff]  ;;  %v119_v34 = vld [vmem:[#allocation3 + $0x20] sm:$0xff]  ;;  %v120_v38 = vld [vmem:[#allocation3 + $0x28] sm:$0xff] }
  0x19   :  { %514 = vmatpush.msra.mxu2 %v156_v6  ;;  %515 = vmatpush.msra.mxu3 %v156_v6  ;;  %v127_v35 = vld [vmem:[#allocation3 + $0x60] sm:$0xff]  ;;  %v128_v39 = vld [vmem:[#allocation3 + $0x68] sm:$0xff]  ;;  %v137_v40 = vld [vmem:[#allocation3 + $0xb0] sm:$0xff] }
  0x1a   :  { %169 = vmatpush.msra.mxu0 %v156_v6  ;;  %513 = vmatpush.msra.mxu1 %v156_v6  ;;  %v145_v41 = vld [vmem:[#allocation3 + $0xf0] sm:$0xff]  ;;  %v138_v44 = vld [vmem:[#allocation3 + $0xb8] sm:$0xff]  ;;  %v667_v48 = vld [vmem:[%s709_s2] ss:$0 sm:$0xff]  ;;  %s631_s2 = smov [#allocation8]  }
  0x1b   :  { %517 = vmatpush.msra.mxu2 %v155_v7  ;;  %518 = vmatpush.msra.mxu3 %v155_v7  ;;  %v121_v42 = vld [vmem:[#allocation3 + $0x30] sm:$0xff]  ;;  %v146_v45 = vld [vmem:[#allocation3 + $0xf8] sm:$0xff]  ;;  %s479_s24 = sshll.u32 %s631_s2, 4  ;;  %s480_s24 = int_to_ptr.vmem [resolvable:$true] %s479_s24 }
  0x1c   :  { %170 = vmatpush.msra.mxu0 %v155_v7  ;;  %516 = vmatpush.msra.mxu1 %v155_v7  ;;  %v129_v43 = vld [vmem:[#allocation3 + $0x70] sm:$0xff]  ;;  %v122_v46 = vld [vmem:[#allocation3 + $0x38] sm:$0xff] }
  0x1d   :  { %520 = vmatpush.msra.mxu2 %v154_v8  ;;  %521 = vmatpush.msra.mxu3 %v154_v8  ;;  %v130_v47 = vld [vmem:[#allocation3 + $0x78] sm:$0xff] }
  0x1e   :  { %171 = vmatpush.msra.mxu0 %v154_v8  ;;  %519 = vmatpush.msra.mxu1 %v154_v8 }
  0x1f   :  { %523 = vmatpush.msra.mxu2 %v153_v9  ;;  %524 = vmatpush.msra.mxu3 %v153_v9 }
  0x20   :  { %172 = vmatpush.msra.mxu0 %v153_v9  ;;  %522 = vmatpush.msra.mxu1 %v153_v9 }
  0x21   :  { %526 = vmatpush.msra.mxu2 %v152_v10  ;;  %527 = vmatpush.msra.mxu3 %v152_v10 }
  0x22   :  { %173 = vmatpush.msra.mxu0 %v152_v10  ;;  %525 = vmatpush.msra.mxu1 %v152_v10 }
  0x23   :  { %529 = vmatpush.msra.mxu2 %v151_v11  ;;  %530 = vmatpush.msra.mxu3 %v151_v11 }
  0x24   :  { %174 = vmatpush.msra.mxu0 %v151_v11  ;;  %528 = vmatpush.msra.mxu1 %v151_v11 }
  0x25   :  { %532 = vmatpush.msra.mxu2 %v150_v12  ;;  %533 = vmatpush.msra.mxu3 %v150_v12 }
  0x26   :  { %175 = vmatpush.msra.mxu0 %v150_v12  ;;  %531 = vmatpush.msra.mxu1 %v150_v12 }
  0x27   :  { %535 = vmatpush.msra.mxu2 %v149_v13  ;;  %536 = vmatpush.msra.mxu3 %v149_v13 }
  0x28   :  { %176 = vmatpush.msra.mxu0 %v149_v13  ;;  %534 = vmatpush.msra.mxu1 %v149_v13 }
  0x29   :  { %538 = vmatpush.msra.mxu2 %v148_v14  ;;  %539 = vmatpush.msra.mxu3 %v148_v14 }
  0x2a   :  { %177 = vmatpush.msra.mxu0 %v148_v14  ;;  %537 = vmatpush.msra.mxu1 %v148_v14 }
  0x2b   :  { %541 = vmatpush.msra.mxu2 %v147_v15  ;;  %542 = vmatpush.msra.mxu3 %v147_v15 }
  0x2c   :  { %227 = vmatmul.f32.vlgmr.msra.gmra.mxu2 %v131_v16  ;;  %251 = vmatmul.f32.vlgmr.msra.gmra.mxu3 %v139_v17 }
  0x2d   :  { %178 = vmatpush.msra.mxu0 %v147_v15  ;;  %540 = vmatpush.msra.mxu1 %v147_v15 }
  0x2e   :  { %179 = vmatmul.f32.vlgmr.msra.gmra.mxu0 %v115_v18  ;;  %203 = vmatmul.f32.vlgmr.msra.gmra.mxu1 %v123_v19 }
  0x34   :  { %230 = vmatmul.f32.gmra.mxu2 %v132_v20  ;;  %254 = vmatmul.f32.gmra.mxu3 %v140_v21 }
  0x36   :  { %182 = vmatmul.f32.gmra.mxu0 %v116_v22  ;;  %206 = vmatmul.f32.gmra.mxu1 %v124_v23 }
  0x3c   :  { %233 = vmatmul.f32.gmra.mxu2 %v133_v24  ;;  %257 = vmatmul.f32.gmra.mxu3 %v141_v25 }
  0x3e   :  { %185 = vmatmul.f32.gmra.mxu0 %v117_v26  ;;  %209 = vmatmul.f32.gmra.mxu1 %v125_v27 }
  0x44   :  { %236 = vmatmul.f32.gmra.mxu2 %v134_v28  ;;  %260 = vmatmul.f32.gmra.mxu3 %v142_v29 }
  0x46   :  { %188 = vmatmul.f32.gmra.mxu0 %v118_v30  ;;  %212 = vmatmul.f32.gmra.mxu1 %v126_v31 }
  0x4c   :  { %239 = vmatmul.f32.gmra.mxu2 %v135_v32  ;;  %263 = vmatmul.f32.gmra.mxu3 %v143_v33 }
  0x4e   :  { %191 = vmatmul.f32.gmra.mxu0 %v119_v34  ;;  %215 = vmatmul.f32.gmra.mxu1 %v127_v35 }
  0x54   :  { %242 = vmatmul.f32.gmra.mxu2 %v136_v36  ;;  %266 = vmatmul.f32.gmra.mxu3 %v144_v37 }
  0x56   :  { %194 = vmatmul.f32.gmra.mxu0 %v120_v38  ;;  %218 = vmatmul.f32.gmra.mxu1 %v128_v39 }
  0x5c   :  { %245 = vmatmul.f32.gmra.mxu2 %v137_v40  ;;  %269 = vmatmul.f32.gmra.mxu3 %v145_v41 }
  0x5e   :  { %197 = vmatmul.f32.gmra.mxu0 %v121_v42  ;;  %221 = vmatmul.f32.gmra.mxu1 %v129_v43 }
  0x64   :  { %248 = vmatmul.f32.gmra.mxu2 %v138_v44  ;;  %272 = vmatmul.f32.gmra.mxu3 %v146_v45 }
  0x66   :  { %200 = vmatmul.f32.gmra.mxu0 %v122_v46  ;;  %224 = vmatmul.f32.gmra.mxu1 %v130_v47 }
  0xab   :  { %v180_v49 = vpop.f32.mrf.mxu0  ;;  %v204_v50 = vpop.f32.mrf.mxu1 }
  0xac   :  { %v379_v51 = vadd.f32 %v667_v48, %v180_v49  ;;  %v387_v52 = vadd.f32 %v667_v48, %v204_v50 }
  0xae   :  { %v411_v53 = vmax.f32 %v379_v51, 0.0  ;;  %v419_v54 = vmax.f32 %v387_v52, 0.0 }
  0xaf   :  { %v228_v55 = vpop.f32.mrf.mxu2  ;;  %v252_v56 = vpop.f32.mrf.mxu3 }
  0xb0   :  { %443 = vst [vmem:[#allocation8] sm:$0xff] %v411_v53  ;;  %v395_v57 = vadd.f32 %v667_v48, %v228_v55  ;;  %v403_v58 = vadd.f32 %v667_v48, %v252_v56 }
  0xb1   :  { %451 = vst [vmem:[#allocation8 + $0x40] sm:$0xff] %v419_v54 }
  0xb2   :  { %v427_v59 = vmax.f32 %v395_v57, 0.0  ;;  %v435_v60 = vmax.f32 %v403_v58, 0.0 }
  0xb3   :  { %v183_v61 = vpop.f32.mrf.mxu0  ;;  %v207_v62 = vpop.f32.mrf.mxu1 }
  0xb4   :  { %459 = vst [vmem:[#allocation8 + $0x80] sm:$0xff] %v427_v59  ;;  %v380_v63 = vadd.f32 %v667_v48, %v183_v61  ;;  %v388_v0 = vadd.f32 %v667_v48, %v207_v62 }
  0xb5   :  { %467 = vst [vmem:[#allocation8 + $0xc0] sm:$0xff] %v435_v60 }
  0xb6   :  { %v412_v1 = vmax.f32 %v380_v63, 0.0  ;;  %v420_v2 = vmax.f32 %v388_v0, 0.0 }
  0xb7   :  { %v231_v3 = vpop.f32.mrf.mxu2  ;;  %v255_v4 = vpop.f32.mrf.mxu3 }
  0xb8   :  { %444 = vst [vmem:[#allocation8 + $0x8] sm:$0xff] %v412_v1  ;;  %v396_v5 = vadd.f32 %v667_v48, %v231_v3  ;;  %v404_v6 = vadd.f32 %v667_v48, %v255_v4 }
  0xb9   :  { %452 = vst [vmem:[#allocation8 + $0x48] sm:$0xff] %v420_v2 }
  0xba   :  { %v428_v7 = vmax.f32 %v396_v5, 0.0  ;;  %v436_v8 = vmax.f32 %v404_v6, 0.0 }
  0xbb   :  { %v186_v9 = vpop.f32.mrf.mxu0  ;;  %v210_v10 = vpop.f32.mrf.mxu1 }
  0xbc   :  { %460 = vst [vmem:[#allocation8 + $0x88] sm:$0xff] %v428_v7  ;;  %v381_v11 = vadd.f32 %v667_v48, %v186_v9  ;;  %v389_v12 = vadd.f32 %v667_v48, %v210_v10 }
  0xbd   :  { %468 = vst [vmem:[#allocation8 + $0xc8] sm:$0xff] %v436_v8 }
  0xbe   :  { %v413_v13 = vmax.f32 %v381_v11, 0.0  ;;  %v421_v14 = vmax.f32 %v389_v12, 0.0 }
  0xbf   :  { %v234_v15 = vpop.f32.mrf.mxu2  ;;  %v258_v16 = vpop.f32.mrf.mxu3 }
  0xc0   :  { %445 = vst [vmem:[#allocation8 + $0x10] sm:$0xff] %v413_v13  ;;  %v397_v17 = vadd.f32 %v667_v48, %v234_v15  ;;  %v405_v18 = vadd.f32 %v667_v48, %v258_v16 }
  0xc1   :  { %453 = vst [vmem:[#allocation8 + $0x50] sm:$0xff] %v421_v14 }
  0xc2   :  { %v429_v19 = vmax.f32 %v397_v17, 0.0  ;;  %v437_v20 = vmax.f32 %v405_v18, 0.0 }
  0xc3   :  { %v189_v21 = vpop.f32.mrf.mxu0  ;;  %v213_v22 = vpop.f32.mrf.mxu1 }
  0xc4   :  { %461 = vst [vmem:[#allocation8 + $0x90] sm:$0xff] %v429_v19  ;;  %v382_v23 = vadd.f32 %v667_v48, %v189_v21  ;;  %v390_v24 = vadd.f32 %v667_v48, %v213_v22 }
  0xc5   :  { %469 = vst [vmem:[#allocation8 + $0xd0] sm:$0xff] %v437_v20 }
  0xc6   :  { %v414_v25 = vmax.f32 %v382_v23, 0.0  ;;  %v422_v26 = vmax.f32 %v390_v24, 0.0 }
  0xc7   :  { %v237_v27 = vpop.f32.mrf.mxu2  ;;  %v261_v28 = vpop.f32.mrf.mxu3 }
  0xc8   :  { %446 = vst [vmem:[#allocation8 + $0x18] sm:$0xff] %v414_v25  ;;  %v398_v29 = vadd.f32 %v667_v48, %v237_v27  ;;  %v406_v30 = vadd.f32 %v667_v48, %v261_v28 }
  0xc9   :  { %454 = vst [vmem:[#allocation8 + $0x58] sm:$0xff] %v422_v26 }
  0xca   :  { %v430_v31 = vmax.f32 %v398_v29, 0.0  ;;  %v438_v32 = vmax.f32 %v406_v30, 0.0 }
  0xcb   :  { %v192_v33 = vpop.f32.mrf.mxu0  ;;  %v216_v34 = vpop.f32.mrf.mxu1 }
  0xcc   :  { %462 = vst [vmem:[#allocation8 + $0x98] sm:$0xff] %v430_v31  ;;  %v383_v35 = vadd.f32 %v667_v48, %v192_v33  ;;  %v391_v36 = vadd.f32 %v667_v48, %v216_v34 }
  0xcd   :  { %470 = vst [vmem:[#allocation8 + $0xd8] sm:$0xff] %v438_v32 }
  0xce   :  { %v415_v37 = vmax.f32 %v383_v35, 0.0  ;;  %v423_v38 = vmax.f32 %v391_v36, 0.0 }
  0xcf   :  { %v240_v39 = vpop.f32.mrf.mxu2  ;;  %v264_v40 = vpop.f32.mrf.mxu3 }
  0xd0   :  { %447 = vst [vmem:[#allocation8 + $0x20] sm:$0xff] %v415_v37  ;;  %v399_v41 = vadd.f32 %v667_v48, %v240_v39  ;;  %v407_v42 = vadd.f32 %v667_v48, %v264_v40 }
  0xd1   :  { %455 = vst [vmem:[#allocation8 + $0x60] sm:$0xff] %v423_v38 }
  0xd2   :  { %v431_v43 = vmax.f32 %v399_v41, 0.0  ;;  %v439_v44 = vmax.f32 %v407_v42, 0.0 }
  0xd3   :  { %v195_v45 = vpop.f32.mrf.mxu0  ;;  %v219_v46 = vpop.f32.mrf.mxu1 }
  0xd4   :  { %463 = vst [vmem:[#allocation8 + $0xa0] sm:$0xff] %v431_v43  ;;  %v384_v47 = vadd.f32 %v667_v48, %v195_v45  ;;  %v392_v49 = vadd.f32 %v667_v48, %v219_v46 }
  0xd5   :  { %471 = vst [vmem:[#allocation8 + $0xe0] sm:$0xff] %v439_v44 }
  0xd6   :  { %v416_v50 = vmax.f32 %v384_v47, 0.0  ;;  %v424_v51 = vmax.f32 %v392_v49, 0.0 }
  0xd7   :  { %v243_v52 = vpop.f32.mrf.mxu2  ;;  %v267_v53 = vpop.f32.mrf.mxu3 }
  0xd8   :  { %448 = vst [vmem:[#allocation8 + $0x28] sm:$0xff] %v416_v50  ;;  %v400_v54 = vadd.f32 %v667_v48, %v243_v52  ;;  %v408_v55 = vadd.f32 %v667_v48, %v267_v53 }
  0xd9   :  { %456 = vst [vmem:[#allocation8 + $0x68] sm:$0xff] %v424_v51 }
  0xda   :  { %v432_v56 = vmax.f32 %v400_v54, 0.0  ;;  %v440_v57 = vmax.f32 %v408_v55, 0.0 }
  0xdb   :  { %v198_v58 = vpop.f32.mrf.mxu0  ;;  %v222_v59 = vpop.f32.mrf.mxu1 }
  0xdc   :  { %464 = vst [vmem:[#allocation8 + $0xa8] sm:$0xff] %v432_v56  ;;  %v385_v60 = vadd.f32 %v667_v48, %v198_v58  ;;  %v393_v61 = vadd.f32 %v667_v48, %v222_v59 }
  0xdd   :  { %472 = vst [vmem:[#allocation8 + $0xe8] sm:$0xff] %v440_v57 }
  0xde   :  { %v417_v62 = vmax.f32 %v385_v60, 0.0  ;;  %v425_v63 = vmax.f32 %v393_v61, 0.0 }
  0xdf   :  { %v246_v0 = vpop.f32.mrf.mxu2  ;;  %v270_v1 = vpop.f32.mrf.mxu3 }
  0xe0   :  { %449 = vst [vmem:[#allocation8 + $0x30] sm:$0xff] %v417_v62  ;;  %v401_v2 = vadd.f32 %v667_v48, %v246_v0  ;;  %v409_v3 = vadd.f32 %v667_v48, %v270_v1 }
  0xe1   :  { %457 = vst [vmem:[#allocation8 + $0x70] sm:$0xff] %v425_v63 }
  0xe2   :  { %v433_v4 = vmax.f32 %v401_v2, 0.0  ;;  %v441_v5 = vmax.f32 %v409_v3, 0.0 }
  0xe3   :  { %v201_v6 = vpop.f32.mrf.mxu0  ;;  %v225_v7 = vpop.f32.mrf.mxu1 }
  0xe4   :  { %465 = vst [vmem:[#allocation8 + $0xb0] sm:$0xff] %v433_v4  ;;  %v386_v8 = vadd.f32 %v667_v48, %v201_v6  ;;  %v394_v9 = vadd.f32 %v667_v48, %v225_v7 }
  0xe5   :  { %473 = vst [vmem:[#allocation8 + $0xf0] sm:$0xff] %v441_v5 }
  0xe6   :  { %v418_v10 = vmax.f32 %v386_v8, 0.0  ;;  %v426_v11 = vmax.f32 %v394_v9, 0.0 }
  0xe7   :  { %v249_v12 = vpop.f32.mrf.mxu2  ;;  %v273_v13 = vpop.f32.mrf.mxu3 }
  0xe8   :  { %450 = vst [vmem:[#allocation8 + $0x38] sm:$0xff] %v418_v10  ;;  %v402_v14 = vadd.f32 %v667_v48, %v249_v12  ;;  %v410_v15 = vadd.f32 %v667_v48, %v273_v13 }
  0xe9   :  { %458 = vst [vmem:[#allocation8 + $0x78] sm:$0xff] %v426_v11 }
  0xea   :  { %v434_v16 = vmax.f32 %v402_v14, 0.0  ;;  %v442_v17 = vmax.f32 %v410_v15, 0.0 }
  0xec   :  { %466 = vst [vmem:[#allocation8 + $0xb8] sm:$0xff] %v434_v16 }
  0xed   :  { %474 = vst [vmem:[#allocation8 + $0xf8] sm:$0xff] %v442_v17 }
  0xee   :  { %487 = dma.vmem_to_hbm [thread:$0]  %s480_s24, 4096, %s482_s27, [#allocation5], %s628_s20, %s628_s20, %s629_s21  }
  0xef   :  { %625 = dma.done.wait [#allocation5], 4096  }
  0xf0   :  { %626 = vsyncadd [#allocation5], 4294963200 }
  0xf1   :  { %492 = vsyncpa [#allocation4], 1 }
  0xf2   :  { %493 = vsyncpa [#allocation7], 1 }
  0xf3   :  { %494 = vsyncpa [#allocation5], 1 }

</bundles_post_ra>
